<compile_context>
chip_gen: v5e
topology: v5e:2x2
jax: 0.10.0
libtpu: 0.0.40
codegen_flags: <defaults>
</compile_context>

<pallas_src>
import functools

import jax
import jax.numpy as jnp
from jax import lax
from jax.experimental import pallas as pl
from jax.experimental.pallas import tpu as pltpu

LANES = 128
SUBLANES = 8                 # f32 sublanes per vreg
CHUNK_ROWS = 64              # 8 vregs per input per inner-loop chunk
MAX_TILE_ROWS = 8192         # 8192 x 128 f32 block = 4 MiB per input per step
FAST_PATH_ELEMS = 64 * 1024  # below this, a fused XLA reduce beats the launch cost


def _round_up(x, m):
    return ((x + m - 1) // m) * m


def _num_tensorcores():
    # Only v7x exposes 2 TensorCores per chip; v5e/v6e are single-TC.
    try:
        kind = jax.devices()[0].device_kind.lower()
    except Exception:  # pragma: no cover - defensive
        return 1
    return 2 if ("v7" in kind or "7x" in kind) else 1


def _iou_kernel(x_ref, y_ref, out_ref, acc_int_ref, acc_tot_ref, *,
                tile_rows, inner_blocks, valid_rows, may_need_mask):
    s = pl.program_id(0)          # split index ("parallel" axis, v7x megacore)
    i = pl.program_id(1)          # row-block index within the split (sequential)

    @pl.when(i == 0)
    def _():
        acc_int_ref[...] = jnp.zeros_like(acc_int_ref)
        acc_tot_ref[...] = jnp.zeros_like(acc_tot_ref)

    block_start = (s * inner_blocks + i) * tile_rows
    num_chunks = tile_rows // CHUNK_ROWS

    def accumulate(mask_rows):
        # Vreg-resident partial sums: hot loop is 2 vld + pure VALU, 0 vst.
        def chunk_body(c, carry):
            acc_i, acc_t = carry
            r0 = pl.multiple_of(c * CHUNK_ROWS, CHUNK_ROWS)
            x = x_ref[pl.ds(r0, CHUNK_ROWS), :].astype(jnp.float32)
            y = y_ref[pl.ds(r0, CHUNK_ROWS), :].astype(jnp.float32)
            if mask_rows:
                row = lax.broadcasted_iota(jnp.int32, (CHUNK_ROWS, LANES), 0)
                valid = (block_start + r0 + row) < valid_rows
                # jnp.where (not multiply-by-mask): kills NaN/Inf garbage from
                # the undefined tail of a partial edge block.
                x = jnp.where(valid, x, jnp.float32(0.0))
                y = jnp.where(valid, y, jnp.float32(0.0))
            prod = (x * y).reshape(CHUNK_ROWS // SUBLANES, SUBLANES, LANES).sum(axis=0)
            tot = (x + y).reshape(CHUNK_ROWS // SUBLANES, SUBLANES, LANES).sum(axis=0)
            return acc_i + prod, acc_t + tot

        zeros = jnp.zeros((SUBLANES, LANES), jnp.float32)
        acc_i, acc_t = lax.fori_loop(0, num_chunks, chunk_body, (zeros, zeros))
        # Single tiny VMEM RMW per 4 MiB block to persist across grid steps.
        acc_int_ref[...] += acc_i
        acc_tot_ref[...] += acc_t

    if may_need_mask:
        is_edge = (block_start + tile_rows) > valid_rows

        @pl.when(jnp.logical_not(is_edge))
        def _():
            accumulate(False)

        @pl.when(is_edge)
        def _():
            accumulate(True)
    else:
        accumulate(False)

    @pl.when(i == pl.num_programs(1) - 1)
    def _():
        # One cross-lane reduce per split, amortized over the whole stream.
        out_ref[0, 0] = jnp.sum(acc_int_ref[...])   # partial intersection
        out_ref[0, 1] = jnp.sum(acc_tot_ref[...])   # partial total


def iou_loss(inputs, targets, smooth=1.0):
    assert inputs.shape == targets.shape, f"{inputs.shape} - {targets.shape}"

    x = inputs.reshape(-1)
    y = targets.reshape(-1)
    # Keep narrow dtypes native in HBM (cast to f32 on the VPU in-kernel); only
    # downcast wider-than-f32 dtypes.
    if jnp.dtype(x.dtype).itemsize > 4:
        x = x.astype(jnp.float32)
    if jnp.dtype(y.dtype).itemsize > 4:
        y = y.astype(jnp.float32)

    n = x.shape[0]

    # Small-input fast path: a fused XLA reduce beats the pallas_call launch.
    if n < FAST_PATH_ELEMS:
        xf = x.astype(jnp.float32)
        yf = y.astype(jnp.float32)
        intersection = jnp.sum(xf * yf)
        total = jnp.sum(xf + yf)
        union = total - intersection
        iou = (intersection + jnp.float32(smooth)) / (union + jnp.float32(smooth))
        return (jnp.float32(1.0) - iou).astype(jnp.float32)

    n_pad = _round_up(n, LANES)
    if n_pad != n:
        # Zeros are neutral for both sum(x*y) and sum(x+y).
        x = jnp.pad(x, (0, n_pad - n))
        y = jnp.pad(y, (0, n_pad - n))
    rows = n_pad // LANES

    # Tile rows are a multiple of CHUNK_ROWS (=64, covers the sublane multiple
    # of every supported dtype) so the in-kernel chunk loop tiles exactly.
    tile_rows = min(MAX_TILE_ROWS, _round_up(rows, CHUNK_ROWS))
    n_row_blocks = pl.cdiv(rows, tile_rows)

    # 2-way parallel split only on 2-TensorCore chips (v7x) and only when the
    # block count divides evenly (no clamped duplicate block / wasted HBM read).
    num_splits = 1
    if _num_tensorcores() >= 2 and n_row_blocks >= 2 and n_row_blocks % 2 == 0:
        num_splits = 2
    inner_blocks = n_row_blocks // num_splits

    # Row masking only needed when the last block extends past the array.
    may_need_mask = (n_row_blocks * tile_rows) != rows

    x2d = x.reshape(rows, LANES)   # layout-compatible reshape (no data movement)
    y2d = y.reshape(rows, LANES)

    def in_index_map(s, i):
        return (s * inner_blocks + i, 0)

    kernel = functools.partial(
        _iou_kernel,
        tile_rows=tile_rows,
        inner_blocks=inner_blocks,
        valid_rows=rows,
        may_need_mask=may_need_mask,
    )

    # Explicit VMEM budget: double-buffered input blocks + headroom. Raises the
    # 16 MiB v5e default; stays well under v7x's 64 MiB physical VMEM.
    block_bytes = tile_rows * LANES * (jnp.dtype(x2d.dtype).itemsize
                                       + jnp.dtype(y2d.dtype).itemsize)
    vmem_limit = int(min(60 * 1024 * 1024,
                         max(32 * 1024 * 1024, 2 * block_bytes + (4 << 20))))

    bytes_accessed = (x2d.size * jnp.dtype(x2d.dtype).itemsize
                      + y2d.size * jnp.dtype(y2d.dtype).itemsize)
    cost = pl.CostEstimate(flops=4 * n_pad, transcendentals=0,
                           bytes_accessed=bytes_accessed)

    partials = pl.pallas_call(
        kernel,
        out_shape=jax.ShapeDtypeStruct((num_splits, 2), jnp.float32),
        grid_spec=pltpu.PrefetchScalarGridSpec(
            num_scalar_prefetch=0,
            grid=(num_splits, inner_blocks),
            in_specs=[
                pl.BlockSpec((tile_rows, LANES), in_index_map),
                pl.BlockSpec((tile_rows, LANES), in_index_map),
            ],
            out_specs=pl.BlockSpec((1, 2), lambda s, i: (s, 0),
                                   memory_space=pltpu.SMEM),
            scratch_shapes=[
                pltpu.VMEM((SUBLANES, LANES), jnp.float32),   # intersection acc
                pltpu.VMEM((SUBLANES, LANES), jnp.float32),   # total acc
            ],
        ),
        compiler_params=pltpu.CompilerParams(
            dimension_semantics=("parallel", "arbitrary"),
            vmem_limit_bytes=vmem_limit),
        cost_estimate=cost,
    )(x2d, y2d)

    intersection = jnp.sum(partials[:, 0])
    total = jnp.sum(partials[:, 1])
    union = total - intersection
    iou = (intersection + jnp.float32(smooth)) / (union + jnp.float32(smooth))
    return (jnp.float32(1.0) - iou).astype(jnp.float32)


def iou_loss_ref(inputs, targets, smooth=1.0):
    x = inputs.reshape(-1).astype(jnp.float32)
    y = targets.reshape(-1).astype(jnp.float32)
    intersection = jnp.sum(x * y)
    total = jnp.sum(x + y)
    union = total - intersection
    return 1.0 - (intersection + smooth) / (union + smooth)


if __name__ == "__main__":
    key = jax.random.PRNGKey(0)

    def make_case(k, shape):
        k1, k2 = jax.random.split(k)
        inp = jax.nn.sigmoid(jax.random.normal(k1, shape, dtype=jnp.float32))
        tgt = (jax.random.uniform(k2, shape) > 0.5).astype(jnp.float32)
        return inp, tgt

    # 1) Primary small NCHW case (fast path, matches module-scale inputs).
    inputs, targets = make_case(key, (2, 4, 16, 16))
    loss = jax.block_until_ready(iou_loss(inputs, targets, smooth=1.0))
    ref = iou_loss_ref(inputs, targets, smooth=1.0)
    assert jnp.allclose(loss, ref, atol=1e-4, rtol=1e-4), (loss, ref)

    # 2) Ragged small case (fast path).
    k3 = jax.random.fold_in(key, 1)
    inputs2, targets2 = make_case(k3, (2, 3, 37, 53))
    loss2 = jax.block_until_ready(iou_loss(inputs2, targets2, smooth=1.0))
    ref2 = iou_loss_ref(inputs2, targets2, smooth=1.0)
    assert jnp.allclose(loss2, ref2, atol=1e-4, rtol=1e-4), (loss2, ref2)

    # 3) Kernel path, exact multiple of 128 (single block, no masking).
    k4 = jax.random.fold_in(key, 2)
    inputs3, targets3 = make_case(k4, (8, 4, 64, 72))
    loss3 = jax.block_until_ready(iou_loss(inputs3, targets3, smooth=1.0))
    ref3 = iou_loss_ref(inputs3, targets3, smooth=1.0)
    assert jnp.allclose(loss3, ref3, atol=1e-4, rtol=1e-4), (loss3, ref3)

    # 4) Kernel path, multi-block ragged input (exercises masked edge block).
    k5 = jax.random.fold_in(key, 3)
    inputs4, targets4 = make_case(k5, (4, 3, 301, 511))
    loss4 = jax.block_until_ready(iou_loss(inputs4, targets4, smooth=1.0))
    ref4 = iou_loss_ref(inputs4, targets4, smooth=1.0)
    assert jnp.allclose(loss4, ref4, atol=1e-4, rtol=1e-4), (loss4, ref4)

    print("KERNEL_OK")
</pallas_src>

<mosaic_0001>
module attributes {stable_mosaic.version = 11 : i64} {
  func.func @_iou_kernel(%arg0: i32, %arg1: i32, %arg2: memref<1152x128xf32, #tpu.memory_space<vmem>>, %arg3: memref<1152x128xf32, #tpu.memory_space<vmem>>, %arg4: memref<1x2xf32, #tpu.memory_space<smem>>, %arg5: memref<8x128xf32, #tpu.memory_space<vmem>>, %arg6: memref<8x128xf32, #tpu.memory_space<vmem>>) attributes {dimension_semantics = [#tpu.dimension_semantics<parallel>, #tpu.dimension_semantics<arbitrary>], iteration_bounds = array<i64: 1, 1>, scalar_prefetch = 0 : i64, scratch_operands = 2 : i64, tpu.core_type = #tpu.core_type<tc>, window_params = [{transform_indices = @transform_0, window_bounds = array<i64: 1152, 128>}, {transform_indices = @transform_1, window_bounds = array<i64: 1152, 128>}, {transform_indices = @transform_2, window_bounds = array<i64: 1, 2>}]} {
    %c0_i32 = arith.constant 0 : i32
    %0 = arith.cmpi eq, %arg1, %c0_i32 : i32
    %1 = arith.extui %0 : i1 to i32
    %c0_i32_0 = arith.constant 0 : i32
    %2 = arith.cmpi ne, %1, %c0_i32_0 : i32
    scf.if %2 {
      %cst_12 = arith.constant 0.000000e+00 : f32
      %15 = vector.broadcast %cst_12 : f32 to vector<8x128xf32>
      %c0_13 = arith.constant 0 : index
      %c0_14 = arith.constant 0 : index
      %16 = vector.load %arg5[%c0_13, %c0_14] : memref<8x128xf32, #tpu.memory_space<vmem>>, vector<8x128xf32>
      tpu.vector_store %arg5[%c0_13, %c0_14], %15 {strides = array<i32>} : memref<8x128xf32, #tpu.memory_space<vmem>>, vector<8x128xf32>,
      %cst_15 = arith.constant 0.000000e+00 : f32
      %17 = vector.broadcast %cst_15 : f32 to vector<8x128xf32>
      %c0_16 = arith.constant 0 : index
      %c0_17 = arith.constant 0 : index
      %18 = vector.load %arg6[%c0_16, %c0_17] : memref<8x128xf32, #tpu.memory_space<vmem>>, vector<8x128xf32>
      tpu.vector_store %arg6[%c0_16, %c0_17], %17 {strides = array<i32>} : memref<8x128xf32, #tpu.memory_space<vmem>>, vector<8x128xf32>,
    } else {
    }
    %cst = arith.constant 0.000000e+00 : f32
    %3 = vector.broadcast %cst : f32 to vector<8x128xf32>
    %c0_i32_1 = arith.constant 0 : i32
    %c18_i32 = arith.constant 18 : i32
    %4 = arith.addi %c0_i32_1, %c18_i32 : i32
    %c1_i32 = arith.constant 1 : i32
    %5:2 = scf.for %arg7 = %c0_i32_1 to %4 step %c1_i32 iter_args(%arg8 = %3, %arg9 = %3) -> (vector<8x128xf32>, vector<8x128xf32>)  : i32 {
      %c64_i32 = arith.constant 64 : i32
      %15 = arith.muli %arg7, %c64_i32 : i32
      %16 = tpu.assume_multiple %15, 64 : i32
      %17 = arith.index_cast %16 : i32 to index
      %c0_12 = arith.constant 0 : index
      %18 = vector.load %arg2[%17, %c0_12] : memref<1152x128xf32, #tpu.memory_space<vmem>>, vector<64x128xf32>
      %19 = arith.index_cast %16 : i32 to index
      %c0_13 = arith.constant 0 : index
      %20 = vector.load %arg3[%19, %c0_13] : memref<1152x128xf32, #tpu.memory_space<vmem>>, vector<64x128xf32>
      %21 = arith.mulf %18, %20 : vector<64x128xf32>
      %22 = vector.shape_cast %21 : vector<64x128xf32> to vector<8x8x128xf32>
      %cst_14 = arith.constant dense<0.000000e+00> : vector<8x128xf32>
      %23 = vector.multi_reduction <add>, %22, %cst_14 [0] : vector<8x8x128xf32> to vector<8x128xf32>
      %24 = arith.addf %18, %20 : vector<64x128xf32>
      %25 = vector.shape_cast %24 : vector<64x128xf32> to vector<8x8x128xf32>
      %cst_15 = arith.constant dense<0.000000e+00> : vector<8x128xf32>
      %26 = vector.multi_reduction <add>, %25, %cst_15 [0] : vector<8x8x128xf32> to vector<8x128xf32>
      %27 = arith.addf %arg8, %23 : vector<8x128xf32>
      %28 = arith.addf %arg9, %26 : vector<8x128xf32>
      scf.yield %27, %28 : vector<8x128xf32>, vector<8x128xf32>
    }
    %c18_i32_2 = arith.constant 18 : i32
    %c0 = arith.constant 0 : index
    %c0_3 = arith.constant 0 : index
    %6 = vector.load %arg5[%c0, %c0_3] : memref<8x128xf32, #tpu.memory_space<vmem>>, vector<8x128xf32>
    %7 = arith.addf %6, %5#0 : vector<8x128xf32>
    %c0_4 = arith.constant 0 : index
    %c0_5 = arith.constant 0 : index
    %8 = vector.load %arg5[%c0_4, %c0_5] : memref<8x128xf32, #tpu.memory_space<vmem>>, vector<8x128xf32>
    tpu.vector_store %arg5[%c0_4, %c0_5], %7 {strides = array<i32>} : memref<8x128xf32, #tpu.memory_space<vmem>>, vector<8x128xf32>,
    %c0_6 = arith.constant 0 : index
    %c0_7 = arith.constant 0 : index
    %9 = vector.load %arg6[%c0_6, %c0_7] : memref<8x128xf32, #tpu.memory_space<vmem>>, vector<8x128xf32>
    %10 = arith.addf %9, %5#1 : vector<8x128xf32>
    %c0_8 = arith.constant 0 : index
    %c0_9 = arith.constant 0 : index
    %11 = vector.load %arg6[%c0_8, %c0_9] : memref<8x128xf32, #tpu.memory_space<vmem>>, vector<8x128xf32>
    tpu.vector_store %arg6[%c0_8, %c0_9], %10 {strides = array<i32>} : memref<8x128xf32, #tpu.memory_space<vmem>>, vector<8x128xf32>,
    %c0_i32_10 = arith.constant 0 : i32
    %12 = arith.cmpi eq, %arg1, %c0_i32_10 : i32
    %13 = arith.extui %12 : i1 to i32
    %c0_i32_11 = arith.constant 0 : i32
    %14 = arith.cmpi ne, %13, %c0_i32_11 : i32
    scf.if %14 {
      %c0_12 = arith.constant 0 : index
      %c0_13 = arith.constant 0 : index
      %15 = vector.load %arg5[%c0_12, %c0_13] : memref<8x128xf32, #tpu.memory_space<vmem>>, vector<8x128xf32>
      %16 = vector.shape_cast %15 : vector<8x128xf32> to vector<1x8x128xf32>
      %cst_14 = arith.constant dense<0.000000e+00> : vector<1xf32>
      %17 = vector.multi_reduction <add>, %16, %cst_14 [1, 2] : vector<1x8x128xf32> to vector<1xf32>
      %18 = vector.shape_cast %17 : vector<1xf32> to vector<1x1x1xf32>
      %19 = vector.extract %18[0, 0, 0] : f32 from vector<1x1x1xf32>
      %c0_15 = arith.constant 0 : index
      %c0_16 = arith.constant 0 : index
      %20 = memref.load %arg4[%c0_15, %c0_16] : memref<1x2xf32, #tpu.memory_space<smem>>
      memref.store %19, %arg4[%c0_15, %c0_16] : memref<1x2xf32, #tpu.memory_space<smem>>
      %c0_17 = arith.constant 0 : index
      %c0_18 = arith.constant 0 : index
      %21 = vector.load %arg6[%c0_17, %c0_18] : memref<8x128xf32, #tpu.memory_space<vmem>>, vector<8x128xf32>
      %22 = vector.shape_cast %21 : vector<8x128xf32> to vector<1x8x128xf32>
      %cst_19 = arith.constant dense<0.000000e+00> : vector<1xf32>
      %23 = vector.multi_reduction <add>, %22, %cst_19 [1, 2] : vector<1x8x128xf32> to vector<1xf32>
      %24 = vector.shape_cast %23 : vector<1xf32> to vector<1x1x1xf32>
      %25 = vector.extract %24[0, 0, 0] : f32 from vector<1x1x1xf32>
      %c0_20 = arith.constant 0 : index
      %c1 = arith.constant 1 : index
      %26 = memref.load %arg4[%c0_20, %c1] : memref<1x2xf32, #tpu.memory_space<smem>>
      memref.store %25, %arg4[%c0_20, %c1] : memref<1x2xf32, #tpu.memory_space<smem>>
    } else {
    }
    return
  }
  func.func @transform_0(%arg0: i32, %arg1: i32) -> (i32, i32) {
    %c1_i32 = arith.constant 1 : i32
    %0 = arith.muli %arg0, %c1_i32 : i32
    %1 = arith.addi %0, %arg1 : i32
    %c0_i32 = arith.constant 0 : i32
    %c0_i32_0 = arith.constant 0 : i32
    return %1, %c0_i32 : i32, i32
  }
  func.func @transform_1(%arg0: i32, %arg1: i32) -> (i32, i32) {
    %c1_i32 = arith.constant 1 : i32
    %0 = arith.muli %arg0, %c1_i32 : i32
    %1 = arith.addi %0, %arg1 : i32
    %c0_i32 = arith.constant 0 : i32
    %c0_i32_0 = arith.constant 0 : i32
    return %1, %c0_i32 : i32, i32
  }
  func.func @transform_2(%arg0: i32, %arg1: i32) -> (i32, i32) {
    %c0_i32 = arith.constant 0 : i32
    %c0_i32_0 = arith.constant 0 : i32
    return %arg0, %c0_i32 : i32, i32
  }
}

</mosaic_0001>

<bundles_post_ra>
// kernel: tpu_custom_call.1
= control target key start
LH: loop header
LB: loop body
LE: loop exit
PB: predicated region body
PF: predicated region fallthrough
CT: control target
= control target key end

     0   :  { %7 = vsyncpa [#allocation5], 0  ;;  %s370_s0 = inlined_call_operand.hbm [shape: f32[1152,128], index: 0, kind: input, shape index: {}]   ;;  %s371_s1 = inlined_call_operand.hbm [shape: f32[1152,128], index: 1, kind: input, shape index: {}]   ;;  %s372_s2 = inlined_call_operand.hbm [shape: f32[1,2], index: 2, kind: output, shape index: {}]  }
   0x1   :  { %8 = vsyncpa [#allocation8], 0 }
   0x2   :  { %9 = vsyncpa [#allocation6], 0  ;;  %s18_s11 = sshll.u32 %s370_s0, 4  ;;  %s311_s12 = smov [#allocation4]   ;;  %s19_s11 = int_to_ptr.hbm [resolvable:$true] %s18_s11 }
   0x3   :  { %s20_s13 = sshll.u32 %s311_s12, 4  ;;  %s35_s16 = sshll.u32 %s371_s1, 4  ;;  %s21_s13 = int_to_ptr.vmem [resolvable:$true] %s20_s13  ;;  %s36_s16 = int_to_ptr.hbm [resolvable:$true] %s35_s16 }
   0x4   :  { %s312_s17 = smov 128   ;;  %s313_s18 = smov 8  }
   0x5   :  { %26 = dma.hbm_to_vmem [thread:$0]  %s19_s11, 18432, %s21_s13, [#allocation5], %s312_s17, %s312_s17, %s313_s18  }
   0x6   :  { %s314_s19 = smov [#allocation7]  }
   0x7   :  { %s37_s20 = sshll.u32 %s314_s19, 4  ;;  %s38_s20 = int_to_ptr.vmem [resolvable:$true] %s37_s20 }
   0x8   :  { %43 = dma.hbm_to_vmem [thread:$0]  %s36_s16, 18432, %s38_s20, [#allocation8], %s312_s17, %s312_s17, %s313_s18  }
   0x9   :  { %293 = dma.done.wait [#allocation5], 18432  }
   0xa   :  { %294 = vsyncadd [#allocation5], 4294948864 }
   0xb   :  { %295 = dma.done.wait [#allocation8], 18432  }
   0xc   :  { %296 = vsyncadd [#allocation8], 4294948864  ;;  %v315_v0 = vmov 0.0   ;;  %v338_v1 = vmov 0.0   ;;  %v340_v2 = vmov 0.0   ;;  %s342_s0 = smov 0  }
   0xd   :  { %60 = vst [vmem:[#allocation2] sm:$0xff] %v315_v0 }
   0xe   :  { %61 = vst [vmem:[#allocation3] sm:$0xff] %v315_v0 }
   0xf LB: > { %s186_s1 = sshll.u32 %s309_s0, 6  ;;  %s67_s0 = sadd.s32 1, %s309_s0   ;;  %s309_s0 = sphi %s342_s0, %s67_s0   ;;  %v305_v2 = vphi %v340_v2, %v374_v2   ;;  %v301_v1 = vphi %v338_v1, %v373_v1  }
  0x10   : > { %s350_s21 = scalar_lea.vmem [#allocation4], %s186_s1  ;;  %s80_s22 = scalar_lea.vmem [#allocation7], %s186_s1 }
  0x11   : > { %v72_v3 = vld [vmem:[%s350_s21] sm:$0xff]  ;;  %v73_v4 = vld [vmem:[%s350_s21 + $0x8] sm:$0xff]  ;;  %v74_v5 = vld [vmem:[%s350_s21 + $0x10] sm:$0xff]  ;;  %p64_p0 = scmp.ge.s32.totalorder %s67_s0, 18  }
  0x12   : > { %v75_v6 = vld [vmem:[%s350_s21 + $0x18] sm:$0xff]  ;;  %v81_v7 = vld [vmem:[%s80_s22] sm:$0xff]  ;;  %v82_v8 = vld [vmem:[%s80_s22 + $0x8] sm:$0xff]  ;;  %s159_s26 = sshll.u32 (%p64_p0), %s372_s2, 4  ;;  %s316_s28 = smov (%p64_p0), [#allocation9]   ;;  %s160_s26 = int_to_ptr.hbm [resolvable:$true] %s159_s26 }
  0x13   : > { %v83_v9 = vld [vmem:[%s80_s22 + $0x10] sm:$0xff]  ;;  %v84_v10 = vld [vmem:[%s80_s22 + $0x18] sm:$0xff]  ;;  %v89_v11 = vmul.f32 %v81_v7, %v72_v3  ;;  %v104_v12 = vadd.f32 %v81_v7, %v72_v3  ;;  %v90_v13 = vmul.f32 %v82_v8, %v73_v4  ;;  %v105_v15 = vadd.f32 %v82_v8, %v73_v4  ;;  %v76_v16 = vld [vmem:[%s350_s21 + $0x20] sm:$0xff] }
  0x14   : > { %v91_v14 = vmul.f32 %v83_v9, %v74_v5  ;;  %v85_v17 = vld [vmem:[%s80_s22 + $0x20] sm:$0xff]  ;;  %v106_v18 = vadd.f32 %v83_v9, %v74_v5  ;;  %v92_v19 = vmul.f32 %v84_v10, %v75_v6  ;;  %v77_v21 = vld [vmem:[%s350_s21 + $0x28] sm:$0xff]  ;;  %v107_v23 = vadd.f32 %v84_v10, %v75_v6  ;;  %v78_v27 = vld [vmem:[%s350_s21 + $0x30] sm:$0xff] }
  0x15   : > { %v97_v20 = vadd.f32 %v90_v13, %v89_v11  ;;  %v86_v22 = vld [vmem:[%s80_s22 + $0x28] sm:$0xff]  ;;  %v112_v24 = vadd.f32 %v105_v15, %v104_v12  ;;  %v93_v25 = vmul.f32 %v85_v17, %v76_v16  ;;  %v87_v28 = vld [vmem:[%s80_s22 + $0x30] sm:$0xff]  ;;  %v108_v29 = vadd.f32 %v85_v17, %v76_v16  ;;  %v79_v33 = vld [vmem:[%s350_s21 + $0x38] sm:$0xff] }
  0x16   : > { %v94_v31 = vmul.f32 %v86_v22, %v77_v21  ;;  %v88_v34 = vld [vmem:[%s80_s22 + $0x38] sm:$0xff]  ;;  %v109_v35 = vadd.f32 %v86_v22, %v77_v21  ;;  %v95_v37 = vmul.f32 %v87_v28, %v78_v27  ;;  %v110_v39 = vadd.f32 %v87_v28, %v78_v27  ;;  %v121_v51 = vld [vmem:[#allocation2] sm:$0xff] (%p64_p0)  ;;  %v124_v52 = vld [vmem:[#allocation3] sm:$0xff] (%p64_p0) }
  0x17   : > { %v98_v26 = vadd.f32 %v97_v20, %v91_v14  ;;  %v113_v30 = vadd.f32 %v112_v24, %v106_v18  ;;  %v96_v41 = vmul.f32 %v88_v34, %v79_v33  ;;  %v111_v43 = vadd.f32 %v88_v34, %v79_v33 }
  0x19   : > { %v99_v32 = vadd.f32 %v98_v26, %v92_v19  ;;  %v114_v36 = vadd.f32 %v113_v30, %v107_v23 }
  0x1b   : > { %v100_v38 = vadd.f32 %v99_v32, %v93_v25  ;;  %v115_v40 = vadd.f32 %v114_v36, %v108_v29 }
  0x1d   : > { %v101_v42 = vadd.f32 %v100_v38, %v94_v31  ;;  %v116_v44 = vadd.f32 %v115_v40, %v109_v35 }
  0x1f   : > { %v102_v45 = vadd.f32 %v101_v42, %v95_v37  ;;  %v117_v46 = vadd.f32 %v116_v44, %v110_v39 }
  0x21   : > { %v103_v47 = vadd.f32 %v102_v45, %v96_v41  ;;  %v118_v48 = vadd.f32 %v117_v46, %v111_v43  ;;  %66 = sbr.rel (!%p64_p0) target bundleno = 15 (0xf), region = 57 }
  0x23   : > { %v119_v49 = vadd.f32 %v305_v2, %v103_v47   ;;  %v120_v50 = vadd.f32 %v301_v1, %v118_v48  }
  0x25   : > { %v373_v1 = vmov %v120_v50  ;;  %v374_v2 = vmov %v119_v49  ;;  %v122_v53 = vadd.f32 (%p64_p0), %v121_v51, %v119_v49  ;;  %v125_v54 = vadd.f32 (%p64_p0), %v124_v52, %v120_v50 }
  0x27   :  { %123 = vst [vmem:[#allocation2] sm:$0xff] %v122_v53  ;;  %131 = vadd.xlane.f32.xlu0 %v122_v53 }
  0x28   :  { %126 = vst [vmem:[#allocation3] sm:$0xff] %v125_v54 }
  0x2f   :  { %143 = vadd.xlane.f32.xlu0 %v125_v54 }
  0x9a   :  { %v132_v55 = vpop.xlane.xlu0 %131 }
  0x9b   :  { %v133_v56 = vrot.slane %v132_v55, 4 }
  0x9d   :  { %v134_v57 = vadd.f32 %v133_v56, %v132_v55 }
  0x9f   :  { %v135_v58 = vrot.slane %v134_v57, 2 }
  0xa1   :  { %v136_v59 = vadd.f32 %v135_v58, %v134_v57 }
  0xa2   :  { %v144_v60 = vpop.xlane.xlu0 %143 }
  0xa3   :  { %v145_v61 = vrot.slane %v144_v60, 4  ;;  %v137_v62 = vrot.slane %v136_v59, 1 }
  0xa5   :  { %v146_v63 = vadd.f32 %v145_v61, %v144_v60  ;;  %v138_v0 = vadd.f32 %v137_v62, %v136_v59 }
  0xa7   :  { %v147_v2 = vrot.slane %v146_v63, 2  ;;  %187 = vpush %v138_v0 }
  0xa9   :  { %v148_v1 = vadd.f32 %v147_v2, %v146_v63 }
  0xab   :  { %v149_v3 = vrot.slane %v148_v1, 1 }
  0xad   :  { %v150_v4 = vadd.f32 %v149_v3, %v148_v1 }
  0xaf   :  { %189 = vpush %v150_v4 }
  0xd8   :  { %s188_s23 = spop %187 }
  0xd9   :  { %141 = sst [smem:[#allocation9]] %s188_s23 }
  0xe0   :  { %s190_s27 = spop %189 }
  0xe1   :  { %153 = sst [smem:[#allocation9 + $0x1]] %s190_s27 }
  0xe2   :  { %162 = dma.smem_to_hbm %s316_s28, 16, %s160_s26, [#allocation6]  }
  0xe3   :  { %297 = dma.done.wait [#allocation6], 16  }
  0xe4   :  { %298 = vsyncadd [#allocation6], 4294967280 }
  0xe5   :  { %167 = sfence }
  0xe6   :  { %168 = vsyncpa [#allocation5], 1 }
  0xe7   :  { %169 = vsyncpa [#allocation8], 1 }
  0xe8   :  { %170 = vsyncpa [#allocation6], 1 }

</bundles_post_ra>
